<compile_context>
chip_gen: v7x
topology: tpu7x:2x2x1
jax: 0.10.0
libtpu: 0.0.40
codegen_flags: <defaults>
</compile_context>

<pallas_src>
import functools

import jax
import jax.numpy as jnp
from jax.experimental import pallas as pl
from jax.experimental.pallas import tpu as pltpu

EPS = 1e-5  # PyTorch BatchNorm1d default eps


# --------------------------------- kernel -----------------------------------
def residual_block_kernel(x_ref, wcv_ref, wpk_ref, o_ref, *, B, Cin, Cout, L, FP):
    """One fused forward pass (batch folded into the lane axis).

    x_ref:   (Cin, B*L)    activations; Cin already padded to the sublane tile
    wcv_ref: (10*Cout, W)  rows [0,2Co): conv1 (+1x1 residual) fused weight,
                           rows [2Co,3Co): conv2 weight,
                           rows [3Co+k*Co, 3Co+(k+1)*Co) lane 0: vector k of
                           (b1, g1, be1, b2, g2, be2, br)
    wpk_ref: (L+1, FP)     projection weight rows 0..L-1, bias in row L
    o_ref:   (B*Cout, FP)  lane-dense projection output (row b*Cout + co)
    """
    f32 = jnp.float32
    N = B * L

    # ---- sequence-seam masks after the batch fold: O(1) in B ---------------
    lane = jax.lax.broadcasted_iota(jnp.int32, (1, N), 1)
    pos = lane % L                                   # L is a power of two here
    seq_first = pos == 0
    seq_last = pos == L - 1

    def taps(a):
        """Stack [a(l-1); a(l); a(l+1)] along sublanes -> (3*C, N), as a value
        (no VMEM scratch round trip)."""
        am1 = jnp.where(seq_first, 0.0, pltpu.roll(a, shift=1, axis=1))
        ap1 = jnp.where(seq_last, 0.0, pltpu.roll(a, shift=N - 1, axis=1))
        return jnp.concatenate([am1, a, ap1], axis=0)

    def vec(k):
        """k-th packed per-channel vector -> (Cout, 1); static sublane slice."""
        r = 3 * Cout + k * Cout
        return wcv_ref[r:r + Cout, 0:1]

    def bn(h, g, be):
        """BatchNorm1d training mode: biased stats over the folded (B, L) lanes,
        centered (two-pass) variance."""
        mu = jnp.mean(h, axis=1, keepdims=True)
        d = h - mu
        var = jnp.mean(d * d, axis=1, keepdims=True)
        return d * (g * jax.lax.rsqrt(var + EPS)) + be

    x = x_ref[...]                                         # (Cin, N)
    w1e = wcv_ref[0:2 * Cout, 0:3 * Cin]                   # conv1 + residual rows
    w2f = wcv_ref[2 * Cout:3 * Cout, 0:3 * Cout]
    b1, g1, be1, b2, g2, be2, br = [vec(k) for k in range(7)]

    # ---- conv1(k=3) fused with the 1x1 residual conv: ONE MXU matmul -------
    # TODO(synk): for bit-strict f32 MXU semantics pass precision=HIGHEST once
    # verified against the Mosaic dot_general lowering; default passes 1e-3.
    y1 = jnp.dot(w1e, taps(x), preferred_element_type=f32)  # (2*Cout, N)
    h = jnp.maximum(bn(y1[:Cout] + b1, g1, be1), 0.0)        # relu(norm1(conv1(x)))
    res = y1[Cout:] + br                                     # residual_conv(x)

    # ---- conv2(k=3): ONE MXU matmul -----------------------------------------
    h = bn(jnp.dot(w2f, taps(h), preferred_element_type=f32) + b2, g2, be2)
    final = h + res                                          # (Cout, N)

    # ---- projection Linear(L -> F): ONE MXU matmul over all batches --------
    stacked = jnp.concatenate([final[:, b * L:(b + 1) * L] for b in range(B)],
                              axis=0)                        # (B*Cout, L)
    wp = wpk_ref[0:L, :]                                     # (L, FP)
    bp = wpk_ref[L:L + 1, :]                                 # (1, FP)
    o_ref[...] = jnp.dot(stacked, wp, preferred_element_type=f32) + bp


# --------------------- one-time parameter packing (init) ---------------------
def pack_residual_block_params(params, B, L):
    """Pack the 12 module tensors into 2 lane/sublane-dense slabs. Run ONCE."""
    Cout, Cin = params["wr"].shape
    F = params["wp"].shape[1]
    assert Cout % 8 == 0, "Cout must be a multiple of the f32 sublane tile (8)"
    Cp = pl.cdiv(Cin, 8) * 8                      # pad Cin to the sublane tile
    FP = pl.cdiv(F, 128) * 128                    # lane-dense output width

    w1 = jnp.pad(params["w1"], ((0, 0), (0, 0), (0, Cp - Cin)))   # (3, Cout, Cp)
    wr = jnp.pad(params["wr"], ((0, 0), (0, Cp - Cin)))           # (Cout, Cp)
    w1f = jnp.transpose(w1, (1, 0, 2)).reshape(Cout, 3 * Cp)      # [co, tap*Cp+ci]
    wre = jnp.zeros((Cout, 3 * Cp), jnp.float32).at[:, Cp:2 * Cp].set(wr)
    w2f = jnp.transpose(params["w2"], (1, 0, 2)).reshape(Cout, 3 * Cout)

    W = max(3 * Cp, 3 * Cout)
    wcv = jnp.zeros((10 * Cout, W), jnp.float32)
    wcv = wcv.at[:Cout, :3 * Cp].set(w1f)
    wcv = wcv.at[Cout:2 * Cout, :3 * Cp].set(wre)        # residual rides on conv1
    wcv = wcv.at[2 * Cout:3 * Cout, :3 * Cout].set(w2f)
    for k, name in enumerate(("b1", "g1", "be1", "b2", "g2", "be2", "br")):
        r = 3 * Cout + k * Cout
        wcv = wcv.at[r:r + Cout, 0:1].set(params[name])  # sublane rows, lane 0

    wpk = jnp.zeros((L + 1, FP), jnp.float32)
    wpk = wpk.at[:L, :F].set(params["wp"])
    wpk = wpk.at[L, :F].set(params["bp"][0])

    cfg = dict(B=B, Cin=Cin, Cp=Cp, Cout=Cout, L=L, F=F, FP=FP)
    return (jax.device_put(wcv), jax.device_put(wpk)), cfg


# ------------------------------ per-call path --------------------------------
def _residual_block_apply(x, wcv, wpk, *, B, Cin, Cp, Cout, L, F, FP):
    N = B * L
    # Only per-call layout plumbing: fold batch into lanes, pad channels.
    x2d = jnp.pad(jnp.transpose(x, (1, 0, 2)).reshape(Cin, N),
                  ((0, Cp - Cin), (0, 0)))                        # (Cp, B*L)

    kernel = functools.partial(residual_block_kernel,
                               B=B, Cin=Cp, Cout=Cout, L=L, FP=FP)
    vmem = pl.BlockSpec(memory_space=pltpu.MemorySpace.VMEM)
    flops = 2 * N * (2 * Cout * 3 * Cp + Cout * 3 * Cout) + 2 * B * Cout * L * FP
    bytes_accessed = 4 * (Cp * N + wcv.size + wpk.size + B * Cout * FP)

    out = pl.pallas_call(
        kernel,
        out_shape=jax.ShapeDtypeStruct((B * Cout, FP), jnp.float32),
        in_specs=[vmem, vmem, vmem],
        out_specs=vmem,
        cost_estimate=pl.CostEstimate(flops=flops,
                                      transcendentals=2 * Cout,
                                      bytes_accessed=bytes_accessed),
    )(x2d, wcv, wpk)
    return out.reshape(B, Cout, FP)[:, :, :F]


def make_residual_block(params, B, L):
    """Pack once at init; return a jitted per-call function of x only."""
    (wcv, wpk), cfg = pack_residual_block_params(params, B, L)

    def apply(x):
        return _residual_block_apply(x, wcv, wpk, **cfg)

    return jax.jit(apply)


# ------------------------- pure-JAX reference (check) ------------------------
def reference(x, p):
    def conv3(h, w3, b):
        w = jnp.transpose(w3, (1, 2, 0))          # (Co, Ci, k)
        y = jax.lax.conv_general_dilated(
            h, w, window_strides=(1,), padding=[(1, 1)],
            dimension_numbers=("NCH", "OIH", "NCH"))
        return y + b[None, :, :]

    def bn(h, g, be):                             # training-mode BatchNorm1d
        mu = jnp.mean(h, axis=(0, 2), keepdims=True)
        var = jnp.mean((h - mu) ** 2, axis=(0, 2), keepdims=True)
        return (h - mu) * jax.lax.rsqrt(var + EPS) * g[None, :, :] + be[None, :, :]

    h = jnp.maximum(bn(conv3(x, p["w1"], p["b1"]), p["g1"], p["be1"]), 0.0)
    h = bn(conv3(h, p["w2"], p["b2"]), p["g2"], p["be2"])
    res = jnp.einsum("oi,bil->bol", p["wr"], x) + p["br"][None, :, :]
    final = h + res
    return jnp.einsum("bol,lf->bof", final, p["wp"]) + p["bp"][None, :, :]


# ---------------------------------- main -------------------------------------
if __name__ == "__main__":
    # L=256 and F=38 are fixed by the module's hard-coded nn.Linear(256, 38).
    B, Cin, Cout, L, F = 2, 4, 8, 256, 38

    key = jax.random.PRNGKey(0)
    ks = jax.random.split(key, 13)
    params = {
        "w1": 0.1 * jax.random.normal(ks[0], (3, Cout, Cin), jnp.float32),
        "b1": 0.1 * jax.random.normal(ks[1], (Cout, 1), jnp.float32),
        "g1": 1.0 + 0.1 * jax.random.normal(ks[2], (Cout, 1), jnp.float32),
        "be1": 0.1 * jax.random.normal(ks[3], (Cout, 1), jnp.float32),
        "w2": 0.1 * jax.random.normal(ks[4], (3, Cout, Cout), jnp.float32),
        "b2": 0.1 * jax.random.normal(ks[5], (Cout, 1), jnp.float32),
        "g2": 1.0 + 0.1 * jax.random.normal(ks[6], (Cout, 1), jnp.float32),
        "be2": 0.1 * jax.random.normal(ks[7], (Cout, 1), jnp.float32),
        "wr": 0.1 * jax.random.normal(ks[8], (Cout, Cin), jnp.float32),   # 1x1 residual conv
        "br": 0.1 * jax.random.normal(ks[9], (Cout, 1), jnp.float32),
        "wp": 0.1 * jax.random.normal(ks[10], (L, F), jnp.float32),       # Linear weight.T
        "bp": 0.1 * jax.random.normal(ks[11], (1, F), jnp.float32),
    }
    x = jax.random.normal(ks[12], (B, Cin, L), jnp.float32)

    rb = make_residual_block(params, B=B, L=L)      # packing happens once here
    out = jax.block_until_ready(rb(x))
    ref = jax.block_until_ready(reference(x, params))

    assert out.shape == (B, Cout, F), out.shape
    assert jnp.allclose(out, ref, rtol=1e-3, atol=1e-3), \
        float(jnp.max(jnp.abs(out - ref)))

    print("KERNEL_OK")
</pallas_src>

<mosaic_0001>
module attributes {stable_mosaic.version = 11 : i64} {
  func.func @residual_block_kernel(%arg0: memref<8x512xf32, #tpu.memory_space<vmem>>, %arg1: memref<80x24xf32, #tpu.memory_space<vmem>>, %arg2: memref<257x128xf32, #tpu.memory_space<vmem>>, %arg3: memref<16x128xf32, #tpu.memory_space<vmem>>) attributes {dimension_semantics = [], scalar_prefetch = 0 : i64, scratch_operands = 0 : i64, tpu.core_type = #tpu.core_type<tc>} {
    %0 = tpu.iota {dimensions = array<i32: 1>} : vector<1x512xi32>
    %c256_i32 = arith.constant 256 : i32
    %c0_i32 = arith.constant 0 : i32
    %1 = arith.cmpi eq, %c256_i32, %c0_i32 : i32
    %c1_i32 = arith.constant 1 : i32
    %2 = arith.select %1, %c1_i32, %c256_i32 : i32
    %3 = vector.broadcast %2 : i32 to vector<1x512xi32>
    %4 = arith.remsi %0, %3 : vector<1x512xi32>
    %c0_i32_0 = arith.constant 0 : i32
    %5 = vector.broadcast %c0_i32_0 : i32 to vector<1x512xi32>
    %6 = arith.cmpi ne, %4, %5 : vector<1x512xi32>
    %c0_i32_1 = arith.constant 0 : i32
    %7 = vector.broadcast %c0_i32_1 : i32 to vector<1x512xi32>
    %8 = arith.cmpi slt, %4, %7 : vector<1x512xi32>
    %c0_i32_2 = arith.constant 0 : i32
    %9 = arith.cmpi slt, %2, %c0_i32_2 : i32
    %10 = vector.broadcast %9 : i1 to vector<1x512xi1>
    %11 = vector.broadcast %10 : vector<1x512xi1> to vector<1x512xi1>
    %12 = arith.xori %8, %11 : vector<1x512xi1>
    %13 = arith.andi %12, %6 : vector<1x512xi1>
    %14 = vector.broadcast %2 : i32 to vector<1x512xi32>
    %15 = arith.addi %4, %14 : vector<1x512xi32>
    %16 = arith.select %13, %15, %4 : vector<1x512xi1>, vector<1x512xi32>
    %c0_i32_3 = arith.constant 0 : i32
    %17 = vector.broadcast %c0_i32_3 : i32 to vector<1x512xi32>
    %18 = arith.cmpi eq, %16, %17 : vector<1x512xi32>
    %c255_i32 = arith.constant 255 : i32
    %19 = vector.broadcast %c255_i32 : i32 to vector<1x512xi32>
    %20 = arith.cmpi eq, %16, %19 : vector<1x512xi32>
    %c0 = arith.constant 0 : index
    %c0_4 = arith.constant 0 : index
    %21 = vector.load %arg0[%c0, %c0_4] : memref<8x512xf32, #tpu.memory_space<vmem>>, vector<8x512xf32>
    %c0_5 = arith.constant 0 : index
    %c0_6 = arith.constant 0 : index
    %22 = vector.load %arg1[%c0_5, %c0_6] : memref<80x24xf32, #tpu.memory_space<vmem>>, vector<16x24xf32>
    %c16 = arith.constant 16 : index
    %c0_7 = arith.constant 0 : index
    %23 = vector.load %arg1[%c16, %c0_7] : memref<80x24xf32, #tpu.memory_space<vmem>>, vector<8x24xf32>
    %c24 = arith.constant 24 : index
    %c0_8 = arith.constant 0 : index
    %24 = vector.load %arg1[%c24, %c0_8] : memref<80x24xf32, #tpu.memory_space<vmem>>, vector<8x1xf32>
    %c32 = arith.constant 32 : index
    %c0_9 = arith.constant 0 : index
    %25 = vector.load %arg1[%c32, %c0_9] : memref<80x24xf32, #tpu.memory_space<vmem>>, vector<8x1xf32>
    %c40 = arith.constant 40 : index
    %c0_10 = arith.constant 0 : index
    %26 = vector.load %arg1[%c40, %c0_10] : memref<80x24xf32, #tpu.memory_space<vmem>>, vector<8x1xf32>
    %c48 = arith.constant 48 : index
    %c0_11 = arith.constant 0 : index
    %27 = vector.load %arg1[%c48, %c0_11] : memref<80x24xf32, #tpu.memory_space<vmem>>, vector<8x1xf32>
    %c56 = arith.constant 56 : index
    %c0_12 = arith.constant 0 : index
    %28 = vector.load %arg1[%c56, %c0_12] : memref<80x24xf32, #tpu.memory_space<vmem>>, vector<8x1xf32>
    %c64 = arith.constant 64 : index
    %c0_13 = arith.constant 0 : index
    %29 = vector.load %arg1[%c64, %c0_13] : memref<80x24xf32, #tpu.memory_space<vmem>>, vector<8x1xf32>
    %c72 = arith.constant 72 : index
    %c0_14 = arith.constant 0 : index
    %30 = vector.load %arg1[%c72, %c0_14] : memref<80x24xf32, #tpu.memory_space<vmem>>, vector<8x1xf32>
    %c1_i32_15 = arith.constant 1 : i32
    %31 = tpu.dynamic_rotate %21 by %c1_i32_15 dim 1 : vector<8x512xf32>, i32 -> vector<8x512xf32>
    %cst = arith.constant 0.000000e+00 : f32
    %32 = vector.shape_cast %18 : vector<1x512xi1> to vector<1x512xi1>
    %33 = vector.broadcast %32 : vector<1x512xi1> to vector<8x512xi1>
    %34 = vector.broadcast %cst : f32 to vector<8x512xf32>
    %35 = arith.select %33, %34, %31 : vector<8x512xi1>, vector<8x512xf32>
    %c511_i32 = arith.constant 511 : i32
    %36 = tpu.dynamic_rotate %21 by %c511_i32 dim 1 : vector<8x512xf32>, i32 -> vector<8x512xf32>
    %cst_16 = arith.constant 0.000000e+00 : f32
    %37 = vector.shape_cast %20 : vector<1x512xi1> to vector<1x512xi1>
    %38 = vector.broadcast %37 : vector<1x512xi1> to vector<8x512xi1>
    %39 = vector.broadcast %cst_16 : f32 to vector<8x512xf32>
    %40 = arith.select %38, %39, %36 : vector<8x512xi1>, vector<8x512xf32>
    %41 = tpu.concatenate %35, %21, %40 in 0 : vector<8x512xf32>, vector<8x512xf32>, vector<8x512xf32> -> vector<24x512xf32>
    %cst_17 = arith.constant dense<0.000000e+00> : vector<16x512xf32>
    %42 = tpu.matmul %22, %41, %cst_17 {dimension_numbers = #tpu.dot_dimension_numbers<[1], [0], [0], [1], [0, 0, 1, 1], [], []>} : vector<16x24xf32>, vector<24x512xf32>, vector<16x512xf32> -> vector<16x512xf32>
    %43 = vector.extract_strided_slice %42 {offsets = [0, 0], sizes = [8, 512], strides = [1, 1]} : vector<16x512xf32> to vector<8x512xf32>
    %44 = vector.broadcast %24 : vector<8x1xf32> to vector<8x512xf32>
    %45 = arith.addf %43, %44 : vector<8x512xf32>
    %cst_18 = arith.constant dense<0.000000e+00> : vector<8xf32>
    %46 = vector.multi_reduction <add>, %45, %cst_18 [1] : vector<8x512xf32> to vector<8xf32>
    %47 = vector.shape_cast %46 : vector<8xf32> to vector<8x1xf32>
    %cst_19 = arith.constant 5.120000e+02 : f32
    %48 = vector.broadcast %cst_19 : f32 to vector<8x1xf32>
    %49 = arith.divf %47, %48 : vector<8x1xf32>
    %50 = vector.broadcast %49 : vector<8x1xf32> to vector<8x512xf32>
    %51 = arith.subf %45, %50 : vector<8x512xf32>
    %52 = arith.mulf %51, %51 : vector<8x512xf32>
    %cst_20 = arith.constant dense<0.000000e+00> : vector<8xf32>
    %53 = vector.multi_reduction <add>, %52, %cst_20 [1] : vector<8x512xf32> to vector<8xf32>
    %54 = vector.shape_cast %53 : vector<8xf32> to vector<8x1xf32>
    %cst_21 = arith.constant 5.120000e+02 : f32
    %55 = vector.broadcast %cst_21 : f32 to vector<8x1xf32>
    %56 = arith.divf %54, %55 : vector<8x1xf32>
    %cst_22 = arith.constant 9.99999974E-6 : f32
    %57 = vector.broadcast %cst_22 : f32 to vector<8x1xf32>
    %58 = arith.addf %56, %57 : vector<8x1xf32>
    %59 = math.rsqrt %58 : vector<8x1xf32>
    %60 = arith.mulf %25, %59 : vector<8x1xf32>
    %61 = vector.broadcast %60 : vector<8x1xf32> to vector<8x512xf32>
    %62 = arith.mulf %51, %61 : vector<8x512xf32>
    %63 = vector.broadcast %26 : vector<8x1xf32> to vector<8x512xf32>
    %64 = arith.addf %62, %63 : vector<8x512xf32>
    %cst_23 = arith.constant 0.000000e+00 : f32
    %65 = vector.broadcast %cst_23 : f32 to vector<8x512xf32>
    %66 = arith.maximumf %64, %65 : vector<8x512xf32>
    %67 = vector.extract_strided_slice %42 {offsets = [8, 0], sizes = [8, 512], strides = [1, 1]} : vector<16x512xf32> to vector<8x512xf32>
    %68 = vector.broadcast %30 : vector<8x1xf32> to vector<8x512xf32>
    %69 = arith.addf %67, %68 : vector<8x512xf32>
    %c1_i32_24 = arith.constant 1 : i32
    %70 = tpu.dynamic_rotate %66 by %c1_i32_24 dim 1 : vector<8x512xf32>, i32 -> vector<8x512xf32>
    %cst_25 = arith.constant 0.000000e+00 : f32
    %71 = vector.shape_cast %18 : vector<1x512xi1> to vector<1x512xi1>
    %72 = vector.broadcast %71 : vector<1x512xi1> to vector<8x512xi1>
    %73 = vector.broadcast %cst_25 : f32 to vector<8x512xf32>
    %74 = arith.select %72, %73, %70 : vector<8x512xi1>, vector<8x512xf32>
    %c511_i32_26 = arith.constant 511 : i32
    %75 = tpu.dynamic_rotate %66 by %c511_i32_26 dim 1 : vector<8x512xf32>, i32 -> vector<8x512xf32>
    %cst_27 = arith.constant 0.000000e+00 : f32
    %76 = vector.shape_cast %20 : vector<1x512xi1> to vector<1x512xi1>
    %77 = vector.broadcast %76 : vector<1x512xi1> to vector<8x512xi1>
    %78 = vector.broadcast %cst_27 : f32 to vector<8x512xf32>
    %79 = arith.select %77, %78, %75 : vector<8x512xi1>, vector<8x512xf32>
    %80 = tpu.concatenate %74, %66, %79 in 0 : vector<8x512xf32>, vector<8x512xf32>, vector<8x512xf32> -> vector<24x512xf32>
    %cst_28 = arith.constant dense<0.000000e+00> : vector<8x512xf32>
    %81 = tpu.matmul %23, %80, %cst_28 {dimension_numbers = #tpu.dot_dimension_numbers<[1], [0], [0], [1], [0, 0, 1, 1], [], []>} : vector<8x24xf32>, vector<24x512xf32>, vector<8x512xf32> -> vector<8x512xf32>
    %82 = vector.broadcast %27 : vector<8x1xf32> to vector<8x512xf32>
    %83 = arith.addf %81, %82 : vector<8x512xf32>
    %cst_29 = arith.constant dense<0.000000e+00> : vector<8xf32>
    %84 = vector.multi_reduction <add>, %83, %cst_29 [1] : vector<8x512xf32> to vector<8xf32>
    %85 = vector.shape_cast %84 : vector<8xf32> to vector<8x1xf32>
    %cst_30 = arith.constant 5.120000e+02 : f32
    %86 = vector.broadcast %cst_30 : f32 to vector<8x1xf32>
    %87 = arith.divf %85, %86 : vector<8x1xf32>
    %88 = vector.broadcast %87 : vector<8x1xf32> to vector<8x512xf32>
    %89 = arith.subf %83, %88 : vector<8x512xf32>
    %90 = arith.mulf %89, %89 : vector<8x512xf32>
    %cst_31 = arith.constant dense<0.000000e+00> : vector<8xf32>
    %91 = vector.multi_reduction <add>, %90, %cst_31 [1] : vector<8x512xf32> to vector<8xf32>
    %92 = vector.shape_cast %91 : vector<8xf32> to vector<8x1xf32>
    %cst_32 = arith.constant 5.120000e+02 : f32
    %93 = vector.broadcast %cst_32 : f32 to vector<8x1xf32>
    %94 = arith.divf %92, %93 : vector<8x1xf32>
    %cst_33 = arith.constant 9.99999974E-6 : f32
    %95 = vector.broadcast %cst_33 : f32 to vector<8x1xf32>
    %96 = arith.addf %94, %95 : vector<8x1xf32>
    %97 = math.rsqrt %96 : vector<8x1xf32>
    %98 = arith.mulf %28, %97 : vector<8x1xf32>
    %99 = vector.broadcast %98 : vector<8x1xf32> to vector<8x512xf32>
    %100 = arith.mulf %89, %99 : vector<8x512xf32>
    %101 = vector.broadcast %29 : vector<8x1xf32> to vector<8x512xf32>
    %102 = arith.addf %100, %101 : vector<8x512xf32>
    %103 = arith.addf %102, %69 : vector<8x512xf32>
    %104 = vector.extract_strided_slice %103 {offsets = [0, 0], sizes = [8, 256], strides = [1, 1]} : vector<8x512xf32> to vector<8x256xf32>
    %105 = vector.extract_strided_slice %103 {offsets = [0, 256], sizes = [8, 256], strides = [1, 1]} : vector<8x512xf32> to vector<8x256xf32>
    %106 = tpu.concatenate %104, %105 in 0 : vector<8x256xf32>, vector<8x256xf32> -> vector<16x256xf32>
    %c0_34 = arith.constant 0 : index
    %c0_35 = arith.constant 0 : index
    %107 = vector.load %arg2[%c0_34, %c0_35] : memref<257x128xf32, #tpu.memory_space<vmem>>, vector<256x128xf32>
    %c256 = arith.constant 256 : index
    %c0_36 = arith.constant 0 : index
    %108 = vector.load %arg2[%c256, %c0_36] : memref<257x128xf32, #tpu.memory_space<vmem>>, vector<1x128xf32>
    %cst_37 = arith.constant dense<0.000000e+00> : vector<16x128xf32>
    %109 = tpu.matmul %106, %107, %cst_37 {dimension_numbers = #tpu.dot_dimension_numbers<[1], [0], [0], [1], [0, 0, 1, 1], [], []>} : vector<16x256xf32>, vector<256x128xf32>, vector<16x128xf32> -> vector<16x128xf32>
    %110 = vector.broadcast %108 : vector<1x128xf32> to vector<16x128xf32>
    %111 = arith.addf %109, %110 : vector<16x128xf32>
    %c0_38 = arith.constant 0 : index
    %c0_39 = arith.constant 0 : index
    %112 = vector.load %arg3[%c0_38, %c0_39] : memref<16x128xf32, #tpu.memory_space<vmem>>, vector<16x128xf32>
    tpu.vector_store %arg3[%c0_38, %c0_39], %111 {strides = array<i32>} : memref<16x128xf32, #tpu.memory_space<vmem>>, vector<16x128xf32>,
    return
  }
}

</mosaic_0001>

<bundles_post_ra>
// kernel: apply.1
= control target key start
LH: loop header
LB: loop body
LE: loop exit
PB: predicated region body
PF: predicated region fallthrough
CT: control target
= control target key end

     0   :  { %8 = vsyncpa [#allocation3], 0  ;;  %s1190_s0 = inlined_call_operand.vmem [shape: f32[8,512], index: 0, kind: input, shape index: {}]   ;;  %s1191_s1 = inlined_call_operand.hbm [shape: f32[80,24], index: 1, kind: input, shape index: {}]   ;;  %s1192_s2 = inlined_call_operand.hbm [shape: f32[257,128], index: 2, kind: input, shape index: {}]   ;;  %s1193_s3 = inlined_call_operand.hbm [shape: f32[16,128], index: 3, kind: output, shape index: {}]  }
   0x1   :  { %9 = vsyncpa [#allocation6], 0 }
   0x2   :  { %10 = vsyncpa [#allocation4], 0  ;;  %s972_s12 = smov [#allocation2]   ;;  %s900_s16 = scalar_lea.hbm %s1191_s1, 1280 }
   0x3   :  { %s18_s13 = sshll.u32 %s972_s12, 4  ;;  %p901_p0 = scmp.ne.s32.totalorder %s1191_s1, %s900_s16  ;;  %s19_s13 = int_to_ptr.vmem [resolvable:$true] %s18_s13 }
   0x4   :  { %p904_p1 = scmp.lt.u32.totalorder %s900_s16, %s1191_s1 }
   0x6   :  { %p906_p2 = pnand %p904_p1, %p901_p0 }
   0x8   :  { %909 = shalt.err (!%p906_p2)
}
   0x9   :  { %s910_s21 = scalar_lea.vmem %s19_s13, 1280  ;;  %p915_p4 = scmp.lt.s32.totalorder %s19_s13, %s19_s13 }
   0xa   :  { %p911_p3 = scmp.ne.s32.totalorder %s19_s13, %s910_s21  ;;  %p916_p5 = scmp.lt.s32.totalorder %s910_s21, %s910_s21 }
   0xc   :  { %p917_p6 = por %p916_p5, %p915_p4 }
   0xe   :  { %p918_p7 = pnand %p917_p6, %p911_p3 }
  0x10   :  { %921 = shalt.err (!%p918_p7)
}
  0x11   :  { %s973_s22 = smov 128   ;;  %s974_s23 = smov 8  }
  0x12   :  { %24 = dma.hbm_to_vmem [thread:$0]  %s1191_s1, 1280, %s19_s13, [#allocation3], %s973_s22, %s973_s22, %s974_s23  }
  0x13   :  { %s975_s26 = smov [#allocation5]   ;;  %s922_s30 = scalar_lea.hbm %s1192_s2, 4224 }
  0x14   :  { %s30_s27 = sshll.u32 %s975_s26, 4  ;;  %p923_p8 = scmp.ne.s32.totalorder %s1192_s2, %s922_s30  ;;  %s31_s27 = int_to_ptr.vmem [resolvable:$true] %s30_s27 }
  0x15   :  { %p926_p9 = scmp.lt.u32.totalorder %s922_s30, %s1192_s2 }
  0x17   :  { %p928_p10 = pnand %p926_p9, %p923_p8 }
  0x19   :  { %931 = shalt.err (!%p928_p10)
}
  0x1a   :  { %s932_s8 = scalar_lea.vmem %s31_s27, 4224  ;;  %p937_p12 = scmp.lt.s32.totalorder %s31_s27, %s31_s27 }
  0x1b   :  { %p933_p11 = scmp.ne.s32.totalorder %s31_s27, %s932_s8  ;;  %p938_p13 = scmp.lt.s32.totalorder %s932_s8, %s932_s8 }
  0x1d   :  { %p939_p0 = por %p938_p13, %p937_p12 }
  0x1f   :  { %p940_p1 = pnand %p939_p0, %p933_p11 }
  0x21   :  { %943 = shalt.err (!%p940_p1)
}
  0x22   :  { %36 = dma.hbm_to_vmem [thread:$0]  %s1192_s2, 4224, %s31_s27, [#allocation6], %s973_s22, %s973_s22, %s974_s23  }
  0x23   :  { %966 = dma.done.wait [#allocation3], 1280  }
  0x24   :  { %967 = vsyncadd [#allocation3], 4294966016 }
  0x25   :  { %968 = dma.done.wait [#allocation6], 4224  }
  0x26   :  { %969 = vsyncadd [#allocation6], 4294963072  ;;  %v976_v0 = vmov 0.0   ;;  %v105_v1 = vld [vmem:[%s1190_s0 + $0x8] sm:$0xff]  ;;  %v104_v2 = vld [vmem:[%s1190_s0] sm:$0xff]  ;;  %s977_s14 = smov 127   ;;  %v43_v8 = vlaneseq }
  0x27   :  { %239 = vmatprep.mubr.f32.mxu1 %v976_v0  ;;  %145 = vrot.lane.b32.xlu1 %v105_v1, %s977_s14  ;;  %v879_v3 = vpack.i.bf16 %v105_v1, %v104_v2  ;;  %v106_v4 = vld [vmem:[%s1190_s0 + $0x10] sm:$0xff]  ;;  %s978_s16 = smov 1   ;;  %v107_v5 = vld [vmem:[%s1190_s0 + $0x18] sm:$0xff]  ;;  %v979_v7 = vmov 0   ;;  %vm980_vm3 = vmmov 1   ;;  %v108_v34 = vld [vmem:[#allocation2] sm:$0xff] }
  0x28   :  { %v111_v6 = vld [vmem:[#allocation2 + $0x18] sm:$0xff]  ;;  %884 = vset.pattern.permute.xlu1 %v979_v7  ;;  %885 = vset.pattern.permute.xlu0 %v979_v7  ;;  %v1052_v9 = vand.u32 127, %v43_v8  ;;  %vm168_vm7 = vcmask 195584   ;;  %v109_v42 = vld [vmem:[#allocation2 + $0x8] sm:$0xff]  ;;  %s981_s0 = smov [#allocation7]  }
  0x29   :  { %880 = vrot.lane.b32.xlu0 %v879_v3, %s978_s16  ;;  %v113_v8 = vld [vmem:[#allocation2 + $0x28] sm:$0xff]  ;;  %s739_s19 = sshll.u32 %s981_s0, 4  ;;  %s740_s19 = int_to_ptr.vmem [resolvable:$true] %s739_s19 }
  0x2a   :  { %v52_v11 = vand.u32 255, %v1052_v9  ;;  %v45_v12 = vadd.s32 128, %v1052_v9  ;;  %vm126_vm0 = vcmp.lt.s32.totalorder %v1052_v9, 1  ;;  %v46_v14 = vadd.s32 256, %v1052_v9  ;;  %v117_v40 = vld [vmem:[#allocation2 + $0x48] sm:$0xff]  ;;  %s944_s20 = scalar_lea.vmem %s740_s19, 256  ;;  %p949_p3 = scmp.lt.s32.totalorder %s740_s19, %s740_s19 }
  0x2b   :  { %147 = vrot.lane.b32.xlu1 %v106_v4, %s977_s14  ;;  %v47_v23 = vadd.s32 384, %v1052_v9  ;;  %vm151_vm2 = vcmp.lt.s32.totalorder %v1052_v9, 127  ;;  %v116_v9 = vld [vmem:[#allocation2 + $0x40] sm:$0xff]  ;;  %p945_p2 = scmp.ne.s32.totalorder %s740_s19, %s944_s20  ;;  %p950_p4 = scmp.lt.s32.totalorder %s944_s20, %s944_s20 }
  0x2c   :  { %vm775_vm1 = vcmp.ne.s32.totalorder %v52_v11, 0  ;;  %v59_v18 = vand.u32 255, %v45_v12  ;;  %v66_v22 = vand.u32 255, %v46_v14 }
  0x2d   :  { %124 = vrot.lane.b32.xlu0 %v107_v5, %s978_s16  ;;  %vm1065_vm4 = vmpackc.low %vm980_vm3, %vm775_vm1  ;;  %v73_v32 = vand.u32 255, %v47_v23  ;;  %p951_p5 = por %p950_p4, %p949_p3 }
  0x2e   :  { %vm1069_vm5 = vcmp.ne.s32.totalorder %v59_v18, 255  ;;  %vm777_vm6 = vcmp.ne.s32.totalorder %v66_v22, 0 }
  0x2f   :  { %122 = vrot.lane.b32.xlu1 %v106_v4, %s978_s16  ;;  %vm1084_vm8 = vmpackc.low %vm980_vm3, %vm777_vm6  ;;  %vm1090_vm9 = vcmp.ne.s32.totalorder %v73_v32, 255  ;;  %p952_p6 = pnand %p951_p5, %p945_p2 }
  0x31   :  { %143 = vrot.lane.b32.xlu0 %v104_v2, %s977_s14 }
  0x33   :  { %331 = vperm.xlu1 %884, %v111_v6  }
  0x35   :  { %149 = vrot.lane.b32.xlu0 %v107_v5, %s977_s14 }
  0x99   :  { %v146_v10 = vpop.permute.xlu1 %145 }
  0x9b   :  { %v881_v13 = vpop.permute.xlu0 %880 }
  0x9c   :  { %v883_v15 = vunpack.i.h.bf16 %v881_v13  ;;  %v882_v16 = vunpack.i.l.bf16 %v881_v13  ;;  %v112_v13 = vld [vmem:[#allocation2 + $0x20] sm:$0xff] }
  0x9d   :  { %v148_v17 = vpop.permute.xlu1 %147 }
  0x9e   :  { %v129_v19 = vsel %vm126_vm0, %v882_v16, %v883_v15  ;;  %v153_v29 = vsel %vm151_vm2, %v146_v10, %v148_v17 }
  0x9f   :  { %v125_v20 = vpop.permute.xlu0 %124  ;;  %v817_v21 = vpack.c.bf16 %v105_v1, %v129_v19 }
  0xa0   :  { %v130_v24 = vsel %vm126_vm0, %v125_v20, %v882_v16  ;;  %v114_v16 = vld [vmem:[#allocation2 + $0x30] sm:$0xff] }
  0xa1   :  { %v819_v26 = vpack.c.bf16 %v104_v2, %v130_v24  ;;  %v123_v27 = vpop.permute.xlu1 %122  ;;  %818 = vmatprep.subr.bf16.mxu1 %v817_v21 }
  0xa2   :  { %v127_v30 = vsel %vm126_vm0, %v123_v27, %v125_v20  ;;  %v128_v33 = vsel %vm126_vm0, %v883_v15, %v123_v27 }
  0xa3   :  { %v144_v31 = vpop.permute.xlu0 %143  ;;  %821 = vmatpush1.bf16.msk.msra.mxu1 %vm1065_vm4, %v819_v26  ;;  %v822_v35 = vpack.c.bf16 %v107_v5, %v127_v30  ;;  %v824_v38 = vpack.c.bf16 %v106_v4, %v128_v33 }
  0xa4   :  { %755 = vmatprep.subr.msk.mxu1 %vm1069_vm5, %v153_v29  ;;  %v154_v37 = vsel %vm151_vm2, %v144_v31, %v146_v10 }
  0xa7   :  { %v150_v39 = vpop.permute.xlu0 %149  ;;  %180 = vmatpush1.msra.mxu1 %v154_v37 }
  0xa8   :  { %v155_v41 = vsel %vm151_vm2, %v150_v39, %v144_v31  ;;  %756 = vmatmul.mubr.msk.f32.vlgmr.msra.gmra.mrb[0].mxu1 %vm168_vm7, %v108_v34  ;;  %823 = vmatprep.subr.bf16.mxu1 %v822_v35  ;;  %v152_v43 = vsel %vm151_vm2, %v148_v17, %v150_v39 }
  0xa9   :  { %826 = vmatpush1.bf16.msk.msra.mxu1 %vm1084_vm8, %v824_v38  ;;  %245 = vmatprep.mubr.f32.mxu1 %v976_v0 }
  0xaa   :  { %761 = vmatprep.subr.msk.mxu1 %vm1090_vm9, %v155_v41 }
  0xac   :  { %757 = vmatmul.mubr.msk.f32.gmra.mrb[2].mxu1 %vm168_vm7, %v109_v42 }
  0xad   :  { %257 = vmatpush1.msra.mxu1 %v152_v43  ;;  %316 = vmatprep.mubr.f32.mxu1 %v976_v0 }
  0xb0   :  { %762 = vmatmul.mubr.msk.f32.vlgmr.msra.gmra.mrb[4].mxu1 %vm168_vm7, %v108_v34 }
  0xb1   :  { %322 = vmatprep.mubr.f32.mxu1 %v976_v0 }
  0xb2   :  { %v332_v46 = vpop.permute.xlu1 %331 }
  0xb4   :  { %763 = vmatmul.mubr.msk.f32.gmra.mrb[6].mxu1 %vm168_vm7, %v109_v42 }
  0xb5   :  { %497 = vmatprep.mubr.f32.mxu1 %v976_v0 }
 0x17b   :  { %v241_v44 = vpop.f32.mrb[0].mxu1 }
 0x17c   :  { %v243_v45 = vpop.f32.mrb[1].mxu1  ;;  %v334_v48 = vadd.f32 %v332_v46, %v241_v44 }
 0x17d   :  { %v335_v49 = vadd.f32 %v332_v46, %v243_v45 }
 0x17f   :  { %v1110_v47 = vpop.f32.mrb[2].mxu1  ;;  %v338_v52 = vadd.f32 %v335_v49, %v334_v48 }
 0x180   :  { %v1112_v50 = vpop.f32.mrb[3].mxu1 }
 0x183   :  { %v318_v51 = vpop.f32.mrb[4].mxu1 }
 0x184   :  { %v336_v53 = vadd.f32 %v332_v46, %v318_v51  ;;  %v320_v54 = vpop.f32.mrb[5].mxu1 }
 0x185   :  { %v337_v55 = vadd.f32 %v332_v46, %v320_v54 }
 0x186   :  { %v339_v56 = vadd.f32 %v338_v52, %v336_v53 }
 0x187   :  { %v1117_v35 = vpop.f32.mrb[6].mxu1 }
 0x188   :  { %v340_v57 = vadd.f32 %v339_v56, %v337_v55  ;;  %v1120_v37 = vpop.f32.mrb[7].mxu1 }
 0x18a   :  { %341 = vadd.xlane.f32.xlu0 %v340_v57  ;;  %v110_v57 = vld [vmem:[#allocation2 + $0x10] sm:$0xff] }
 0x217   :  { %v342_v58 = vpop.xlane.xlu0 %341 }
 0x218   :  { %v344_v59 = vmul.f32 0.001953125, %v342_v58 }
 0x21a   :  { %v345_v60 = vsub.f32 %v334_v48, %v344_v59  ;;  %v346_v61 = vsub.f32 %v335_v49, %v344_v59  ;;  %v347_v62 = vsub.f32 %v336_v53, %v344_v59  ;;  %v348_v63 = vsub.f32 %v337_v55, %v344_v59 }
 0x21c   :  { %v349_v1 = vmul.f32 %v345_v60, %v345_v60  ;;  %v350_v2 = vmul.f32 %v346_v61, %v346_v61  ;;  %v351_v3 = vmul.f32 %v347_v62, %v347_v62  ;;  %v352_v5 = vmul.f32 %v348_v63, %v348_v63 }
 0x21e   :  { %v353_v4 = vadd.f32 %v350_v2, %v349_v1 }
 0x220   :  { %v354_v6 = vadd.f32 %v353_v4, %v351_v3 }
 0x222   :  { %v355_v7 = vadd.f32 %v354_v6, %v352_v5 }
 0x224   :  { %356 = vadd.xlane.f32.xlu1 %v355_v7 }
 0x235   :  { %373 = vperm.xlu1 %884, %v113_v8  }
 0x2b1   :  { %v357_v10 = vpop.xlane.xlu1 %356 }
 0x2b2   :  { %v358_v11 = vmul.f32 0.001953125, %v357_v10 }
 0x2b4   :  { %v359_v12 = vadd.f32 1e-05, %v358_v11 }
 0x2b5   :  { %v374_v22 = vpop.permute.xlu1 %373 }
 0x2b6   :  { %896 = vrsqrt.f32 %v359_v12 }
 0x2c0   :  { %v897_v14 = vpop.eup %896 }
 0x2c1   :  { %v361_v15 = vmul.f32 %v897_v14, %v112_v13 }
 0x2c3   :  { %364 = vperm.xlu0 %885, %v361_v15  }
 0x2c7   :  { %427 = vperm.xlu0 %885, %v114_v16  }
 0x342   :  { %v365_v17 = vpop.permute.xlu0 %364 }
 0x343   :  { %v367_v18 = vmul.f32 %v365_v17, %v345_v60  ;;  %v368_v19 = vmul.f32 %v365_v17, %v346_v61  ;;  %v369_v20 = vmul.f32 %v365_v17, %v347_v62  ;;  %v370_v21 = vmul.f32 %v365_v17, %v348_v63 }
 0x345   :  { %v376_v23 = vadd.f32 %v374_v22, %v367_v18  ;;  %v377_v24 = vadd.f32 %v374_v22, %v368_v19  ;;  %v378_v26 = vadd.f32 %v374_v22, %v369_v20  ;;  %v379_v27 = vadd.f32 %v374_v22, %v370_v21 }
 0x346   :  { %v428_v1 = vpop.permute.xlu0 %427 }
 0x347   :  { %v380_v29 = vmax.f32 %v376_v23, 0.0  ;;  %v381_v30 = vmax.f32 %v377_v24, 0.0  ;;  %v382_v31 = vmax.f32 %v378_v26, 0.0  ;;  %v383_v32 = vmax.f32 %v379_v27, 0.0  ;;  %v636_v23 = vld [vmem:[#allocation5 + $0x80] sm:$0xff]  ;;  %v637_v24 = vld [vmem:[#allocation5 + $0x88] sm:$0xff] }
 0x348   :  { %v620_v26 = vld [vmem:[#allocation5] sm:$0xff]  ;;  %v837_v27 = vpack.c.bf16 %v637_v24, %v636_v23 }
 0x349   :  { %v886_v33 = vpack.i.bf16 %v381_v30, %v380_v29  ;;  %v891_v34 = vpack.i.bf16 %v382_v31, %v383_v32 }
 0x34a   :  { %838 = vmatprep.subr.bf16.mxu0 %v837_v27 }
 0x34b   :  { %887 = vrot.lane.b32.xlu1 %v886_v33, %s978_s16 }
 0x34f   :  { %892 = vrot.lane.b32.xlu1 %v891_v34, %s978_s16  ;;  %v622_v34 = vld [vmem:[#allocation5 + $0x10] sm:$0xff] }
 0x353   :  { %411 = vrot.lane.b32.xlu1 %v381_v30, %s977_s14 }
 0x357   :  { %413 = vrot.lane.b32.xlu1 %v382_v31, %s977_s14 }
 0x35b   :  { %409 = vrot.lane.b32.xlu1 %v380_v29, %s977_s14 }
 0x35f   :  { %415 = vrot.lane.b32.xlu1 %v383_v32, %s977_s14 }
 0x3bd   :  { %v888_v38 = vpop.permute.xlu1 %887 }
 0x3be   :  { %v890_v39 = vunpack.i.h.bf16 %v888_v38  ;;  %v889_v41 = vunpack.i.l.bf16 %v888_v38  ;;  %v623_v38 = vld [vmem:[#allocation5 + $0x18] sm:$0xff] }
 0x3c0   :  { %v403_v42 = vsel %vm126_vm0, %v889_v41, %v890_v39 }
 0x3c1   :  { %v893_v43 = vpop.permute.xlu1 %892  ;;  %v827_v44 = vpack.c.bf16 %v381_v30, %v403_v42  ;;  %v638_v30 = vld [vmem:[#allocation5 + $0x90] sm:$0xff]  ;;  %v843_v42 = vpack.c.bf16 %v623_v38, %v622_v34 }
 0x3c2   :  { %v894_v45 = vunpack.i.l.bf16 %v893_v43  ;;  %v895_v51 = vunpack.i.h.bf16 %v893_v43 }
 0x3c3   :  { %828 = vmatprep.subr.bf16.mxu1 %v827_v44  ;;  %v624_v44 = vld [vmem:[#allocation5 + $0x20] sm:$0xff] }
 0x3c4   :  { %v404_v46 = vsel %vm126_vm0, %v894_v45, %v889_v41  ;;  %v401_v54 = vsel %vm126_vm0, %v895_v51, %v894_v45  ;;  %v402_v55 = vsel %vm126_vm0, %v890_v39, %v895_v51  ;;  %v640_v39 = vld [vmem:[#allocation5 + $0xa0] sm:$0xff]  ;;  %v641_v41 = vld [vmem:[#allocation5 + $0xa8] sm:$0xff] }
 0x3c5   :  { %v829_v48 = vpack.c.bf16 %v380_v29, %v404_v46  ;;  %v412_v49 = vpop.permute.xlu1 %411  ;;  %v832_v25 = vpack.c.bf16 %v383_v32, %v401_v54  ;;  %v834_v59 = vpack.c.bf16 %v382_v31, %v402_v55  ;;  %v621_v29 = vld [vmem:[#allocation5 + $0x8] sm:$0xff]  ;;  %v639_v31 = vld [vmem:[#allocation5 + $0x98] sm:$0xff]  ;;  %v845_v43 = vpack.c.bf16 %v641_v41, %v640_v39  ;;  %v642_v46 = vld [vmem:[#allocation5 + $0xb0] sm:$0xff] }
 0x3c6   :  { %v839_v32 = vpack.c.bf16 %v621_v29, %v620_v26  ;;  %v841_v33 = vpack.c.bf16 %v639_v31, %v638_v30  ;;  %v625_v45 = vld [vmem:[#allocation5 + $0x28] sm:$0xff]  ;;  %v644_v54 = vld [vmem:[#allocation5 + $0xc0] sm:$0xff] }
 0x3c7   :  { %831 = vmatpush1.bf16.msk.msra.mxu1 %vm1065_vm4, %v829_v48  ;;  %v643_v48 = vld [vmem:[#allocation5 + $0xb8] sm:$0xff]  ;;  %v645_v55 = vld [vmem:[#allocation5 + $0xc8] sm:$0xff] }
 0x3c8   :  { %840 = vmatpush3.bf16.msra.mxu0 %v839_v32  ;;  %v849_v51 = vpack.c.bf16 %v643_v48, %v642_v46 }
 0x3c9   :  { %v414_v52 = vpop.permute.xlu1 %413  ;;  %842 = vmatprep.subr.bf16.mxu0 %v841_v33 }
 0x3ca   :  { %v418_v53 = vsel %vm151_vm2, %v412_v49, %v414_v52 }
 0x3cb   :  { %767 = vmatprep.subr.msk.mxu1 %vm1069_vm5, %v418_v53  ;;  %v627_v53 = vld [vmem:[#allocation5 + $0x38] sm:$0xff] }
 0x3cc   :  { %844 = vmatpush3.bf16.msra.mxu0 %v843_v42 }
 0x3cd   :  { %v410_v56 = vpop.permute.xlu1 %409  ;;  %846 = vmatprep.subr.bf16.mxu0 %v845_v43 }
 0x3ce   :  { %v419_v58 = vsel %vm151_vm2, %v410_v56, %v412_v49  ;;  %v847_v49 = vpack.c.bf16 %v625_v45, %v624_v44 }
 0x3cf   :  { %438 = vmatpush1.msra.mxu1 %v419_v58  ;;  %v628_v58 = vld [vmem:[#allocation5 + $0x40] sm:$0xff] }
 0x3d0   :  { %768 = vmatmul.mubr.msk.f32.vlgmr.msra.gmra.mrb[8].mxu1 %vm168_vm7, %v110_v57  ;;  %833 = vmatprep.subr.bf16.mxu1 %v832_v25  ;;  %v629_v25 = vld [vmem:[#allocation5 + $0x48] sm:$0xff] }
 0x3d1   :  { %v416_v60 = vpop.permute.xlu1 %415  ;;  %836 = vmatpush1.bf16.msk.msra.mxu1 %vm1084_vm8, %v834_v59  ;;  %568 = vmatprep.mubr.f32.mxu1 %v976_v0  ;;  %v646_v59 = vld [vmem:[#allocation5 + $0xd0] sm:$0xff] }
 0x3d2   :  { %v420_v28 = vsel %vm151_vm2, %v416_v60, %v410_v56  ;;  %v417_v61 = vsel %vm151_vm2, %v414_v52, %v416_v60  ;;  %v626_v52 = vld [vmem:[#allocation5 + $0x30] sm:$0xff]  ;;  %848 = vmatpush3.bf16.msra.mxu0 %v847_v49  ;;  %v647_v60 = vld [vmem:[#allocation5 + $0xd8] sm:$0xff] }
 0x3d3   :  { %772 = vmatprep.subr.msk.mxu1 %vm1090_vm9, %v420_v28  ;;  %v851_v56 = vpack.c.bf16 %v627_v53, %v626_v52  ;;  %850 = vmatprep.subr.bf16.mxu0 %v849_v51  ;;  %v855_v28 = vpack.c.bf16 %v629_v25, %v628_v58 }
 0x3d5   :  { %509 = vmatpush1.msra.mxu1 %v417_v61  ;;  %v857_v61 = vpack.c.bf16 %v647_v60, %v646_v59 }
 0x3d6   :  { %773 = vmatmul.mubr.msk.f32.vlgmr.msra.gmra.mrb[10].mxu1 %vm168_vm7, %v110_v57  ;;  %v853_v57 = vpack.c.bf16 %v645_v55, %v644_v54  ;;  %852 = vmatpush3.bf16.msra.mxu0 %v851_v56 }
 0x3d8   :  { %854 = vmatprep.subr.bf16.mxu0 %v853_v57 }
 0x3da   :  { %856 = vmatpush3.bf16.msra.mxu0 %v855_v28 }
 0x3db   :  { %858 = vmatprep.subr.bf16.mxu0 %v857_v61 }
 0x4a3   :  { %v499_v62 = vpop.f32.mrb[8].mxu1 }
 0x4a4   :  { %v501_v63 = vpop.f32.mrb[9].mxu1  ;;  %v500_v2 = vadd.f32 %v499_v62, %v428_v1  ;;  %v630_v62 = vld [vmem:[#allocation5 + $0x50] sm:$0xff] }
 0x4a5   :  { %v502_v36 = vadd.f32 %v501_v63, %v428_v1  ;;  %v631_v63 = vld [vmem:[#allocation5 + $0x58] sm:$0xff] }
 0x4a7   :  { %v575_v4 = vadd.f32 %v502_v36, %v500_v2 }
 0x4a9   :  { %v570_v3 = vpop.f32.mrb[10].mxu1 }
 0x4aa   :  { %v571_v0 = vadd.f32 %v570_v3, %v428_v1  ;;  %v572_v5 = vpop.f32.mrb[11].mxu1 }
 0x4ab   :  { %v573_v6 = vadd.f32 %v572_v5, %v428_v1  ;;  %v648_v1 = vld [vmem:[#allocation5 + $0xe0] sm:$0xff] }
 0x4ac   :  { %v576_v7 = vadd.f32 %v575_v4, %v571_v0 }
 0x4ae   :  { %v577_v8 = vadd.f32 %v576_v7, %v573_v6 }
 0x4b0   :  { %578 = vadd.xlane.f32.xlu1 %v577_v8  ;;  %v632_v8 = vld [vmem:[#allocation5 + $0x60] sm:$0xff] }
 0x4c1   :  { %386 = vperm.xlu1 %884, %v117_v40   ;;  %v633_v40 = vld [vmem:[#allocation5 + $0x68] sm:$0xff] }
 0x4c5   :  { %609 = vperm.xlu1 %884, %v116_v9  }
 0x53d   :  { %v579_v10 = vpop.xlane.xlu1 %578 }
 0x53e   :  { %v580_v11 = vmul.f32 0.001953125, %v579_v10  ;;  %v863_v10 = vpack.c.bf16 %v633_v40, %v632_v8 }
 0x540   :  { %v1151_v12 = vsub.f32 %v500_v2, %v580_v11  ;;  %v1153_v13 = vsub.f32 %v502_v36, %v580_v11  ;;  %v1155_v14 = vsub.f32 %v571_v0, %v580_v11  ;;  %v1159_v16 = vsub.f32 %v573_v6, %v580_v11  ;;  %v649_v2 = vld [vmem:[#allocation5 + $0xe8] sm:$0xff]  ;;  %v650_v11 = vld [vmem:[#allocation5 + $0xf0] sm:$0xff] }
 0x541   :  { %v859_v36 = vpack.c.bf16 %v631_v63, %v630_v62  ;;  %v861_v3 = vpack.c.bf16 %v649_v2, %v648_v1  ;;  %v115_v6 = vld [vmem:[#allocation2 + $0x38] sm:$0xff] }
 0x542   :  { %v585_v15 = vmul.f32 %v1151_v12, %v1151_v12  ;;  %v586_v17 = vmul.f32 %v1153_v13, %v1153_v13  ;;  %v587_v18 = vmul.f32 %v1155_v14, %v1155_v14  ;;  %v588_v20 = vmul.f32 %v1159_v16, %v1159_v16 }
 0x543   :  { %860 = vmatpush3.bf16.msra.mxu0 %v859_v36 }
 0x544   :  { %v589_v19 = vadd.f32 %v586_v17, %v585_v15  ;;  %862 = vmatprep.subr.bf16.mxu0 %v861_v3  ;;  %v651_v15 = vld [vmem:[#allocation5 + $0xf8] sm:$0xff] }
 0x545   :  { %v865_v17 = vpack.c.bf16 %v651_v15, %v650_v11 }
 0x546   :  { %v590_v21 = vadd.f32 %v589_v19, %v587_v18  ;;  %v634_v18 = vld [vmem:[#allocation5 + $0x70] sm:$0xff]  ;;  %v635_v19 = vld [vmem:[#allocation5 + $0x78] sm:$0xff] }
 0x547   :  { %864 = vmatpush3.bf16.msra.mxu0 %v863_v10 }
 0x548   :  { %v591_v22 = vadd.f32 %v590_v21, %v588_v20  ;;  %v867_v20 = vpack.c.bf16 %v635_v19, %v634_v18  ;;  %866 = vmatprep.subr.bf16.mxu0 %v865_v17  ;;  %v387_v21 = vpop.permute.xlu1 %386 }
 0x549   :  { %v389_v27 = vadd.f32 %v387_v21, %v1110_v47  ;;  %v390_v33 = vadd.f32 %v387_v21, %v1112_v50  ;;  %v392_v38 = vadd.f32 %v387_v21, %v1120_v37 }
 0x54a   :  { %592 = vadd.xlane.f32.xlu0 %v591_v22 }
 0x54b   :  { %868 = vmatpush3.bf16.msra.mxu0 %v867_v20 }
 0x54c   :  { %v610_v29 = vpop.permute.xlu1 %609 }
 0x5d7   :  { %v593_v4 = vpop.xlane.xlu0 %592 }
 0x5d8   :  { %v594_v0 = vmul.f32 0.001953125, %v593_v4 }
 0x5da   :  { %v595_v5 = vadd.f32 1e-05, %v594_v0 }
 0x5dc   :  { %898 = vrsqrt.f32 %v595_v5 }
 0x5e6   :  { %v899_v7 = vpop.eup %898 }
 0x5e7   :  { %v597_v9 = vmul.f32 %v899_v7, %v115_v6 }
 0x5e9   :  { %600 = vperm.xlu0 %885, %v597_v9  }
 0x668   :  { %v601_v22 = vpop.permute.xlu0 %600 }
 0x669   :  { %v603_v23 = vmul.f32 %v601_v22, %v1151_v12  ;;  %v604_v24 = vmul.f32 %v601_v22, %v1153_v13  ;;  %v606_v26 = vmul.f32 %v601_v22, %v1159_v16  ;;  %v605_v30 = vmul.f32 %v601_v22, %v1155_v14  ;;  %v774_v14 = vld [vmem:[#allocation5 + $0x100] ss:$0 sm:$0xff] }
 0x66a   :  { %v391_v13 = vadd.f32 %v387_v21, %v1117_v35 }
 0x66b   :  { %v612_v31 = vadd.f32 %v610_v29, %v603_v23  ;;  %v615_v32 = vadd.f32 %v610_v29, %v606_v26  ;;  %v613_v34 = vadd.f32 %v610_v29, %v604_v24  ;;  %v614_v42 = vadd.f32 %v610_v29, %v605_v30 }
 0x66d   :  { %v617_v39 = vadd.f32 %v613_v34, %v390_v33  ;;  %v616_v41 = vadd.f32 %v612_v31, %v389_v27  ;;  %v619_v12 = vadd.f32 %v615_v32, %v392_v38  ;;  %v618_v47 = vadd.f32 %v614_v42, %v391_v13 }
 0x66f   :  { %721 = vmatprep.mubr.f32.mxu0 %v617_v39 }
 0x670   :  { %722 = vmatmul.mubr.f32.vlgmr.msra.gmra.mrb[0].mxu0 %v616_v41 }
 0x671   :  { %726 = vmatprep.mubr.f32.mxu0 %v619_v12 }
 0x674   :  { %727 = vmatmul.mubr.f32.gmra.mrb[2].mxu0 %v618_v47 }
 0x743   :  { %v811_v16 = vpop.f32.mrb[0].mxu0 }
 0x744   :  { %v812_v43 = vpop.f32.mrb[1].mxu0 }
 0x745   :  { %v813_v44 = vadd.f32 %v812_v43, %v811_v16 }
 0x747   :  { %v724_v45 = vadd.f32 %v813_v44, %v774_v14  ;;  %v814_v50 = vpop.f32.mrb[2].mxu0 }
 0x748   :  { %v815_v46 = vpop.f32.mrb[3].mxu0 }
 0x749   :  { %732 = vst [vmem:[#allocation7] sm:$0xff] %v724_v45  ;;  %v816_v37 = vadd.f32 %v815_v46, %v814_v50 }
 0x74b   :  { %v729_v48 = vadd.f32 %v816_v37, %v774_v14 }
 0x74d   :  { %733 = vst [vmem:[#allocation7 + $0x8] sm:$0xff] %v729_v48 }
 0x74e   :  { %955 = shalt.err (!%p952_p6)
}
 0x74f   :  { %s956_s25 = scalar_lea.hbm %s1193_s3, 256 }
 0x750   :  { %p957_p7 = scmp.ne.s32.totalorder %s1193_s3, %s956_s25  ;;  %p960_p8 = scmp.lt.u32.totalorder %s956_s25, %s1193_s3 }
 0x752   :  { %p962_p9 = pnand %p960_p8, %p957_p7 }
 0x754   :  { %965 = shalt.err (!%p962_p9)
}
 0x755   :  { %745 = dma.vmem_to_hbm [thread:$0]  %s740_s19, 256, %s1193_s3, [#allocation4], %s973_s22, %s973_s22, %s974_s23  }
 0x756   :  { %970 = dma.done.wait [#allocation4], 256  }
 0x757   :  { %971 = vsyncadd [#allocation4], 4294967040 }
 0x758   :  { %749 = vsyncpa [#allocation3], 1 }
 0x759   :  { %750 = vsyncpa [#allocation6], 1 }
 0x75a   :  { %751 = vsyncpa [#allocation4], 1 }

</bundles_post_ra>
